<compile_context>
chip_gen: v7x
topology: tpu7x:2x2x1
jax: 0.10.0
libtpu: 0.0.40
codegen_flags: <defaults>
</compile_context>

<pallas_src>
import functools
import math

import numpy as np
import jax
import jax.numpy as jnp
from jax.experimental import pallas as pl
from jax.experimental.pallas import tpu as pltpu


def filter_layer_kernel(x_ref, bfwd_ref, wr_ref, wi_ref, gmat_ref,
                        gamma_ref, beta_ref, o_ref):
    fp = wr_ref.shape[0]                     # padded frequency count (mult of 16)

    x = x_ref[0]                             # (S, bt*D) f32
    bfwd = bfwd_ref[...]                     # (2Fp, S) bf16 = [Cr; Ci]

    # Forward rfft (ortho): single MXU matmul, [Xr; Xi] stacked on sublanes.
    xf = jnp.dot(bfwd, x.astype(jnp.bfloat16),
                 preferred_element_type=jnp.float32)          # (2Fp, bt*D) f32
    xr = xf[:fp]
    xi = xf[fp:]

    # Complex multiply with the learned filter (f32 on the VPU).  The irfft
    # per-frequency scale c is already folded into wr/wi by the wrapper.
    wr = wr_ref[...]                         # (Fp, bt*D) f32
    wi = wi_ref[...]                         # (Fp, bt*D) f32
    yr = xr * wr - xi * wi
    yi = xr * wi + xi * wr
    ys = jnp.concatenate([yr, yi], axis=0).astype(jnp.bfloat16)   # (2Fp, bt*D)

    # Inverse rfft (n=S, ortho): contract the frequency axis of the SAME basis
    # (binv == c * bfwd^T), so no second basis is resident in VMEM.
    y = jax.lax.dot_general(bfwd, ys, (((0,), (0,)), ((), ())),
                            preferred_element_type=jnp.float32)   # (S, bt*D)

    # Dropout (eval) == identity; residual add (f32).
    h = y + x

    # LayerNorm over the hidden dim: hidden lives inside the lane axis
    # (lane = b*D + d), so per-(row, batch) mean/var are computed with a
    # block-diagonal (1/D) matmul, which also broadcasts them back for free.
    gmat = gmat_ref[...]                     # (bt*D, bt*D) f32 block-diag 1/D
    mean = jnp.dot(h, gmat, preferred_element_type=jnp.float32)
    hc = h - mean
    var = jnp.dot(hc * hc, gmat, preferred_element_type=jnp.float32)
    normed = hc * jax.lax.rsqrt(var + 1e-12)

    o_ref[0] = normed * gamma_ref[...] + beta_ref[...]


def _round_up(x, m):
    return (x + m - 1) // m * m


@functools.lru_cache(maxsize=None)
def _dft_basis(seq_len):
    """Stacked, zero-padded rfft (ortho) basis + irfft combination scale c.

    Returns:
      bfwd: (2*Fp, S) bf16, rows [0:F) = cos/sqrt(S), rows [Fp:Fp+F) = -sin/sqrt(S).
      c:    (F,) f32 irfft conjugate-symmetry weights (1, 2, ..., 2[, 1]).
      F, Fp
    """
    S = seq_len
    F = S // 2 + 1
    Fp = _round_up(F, 16)   # bf16 sublane packing is 16 -> tile-aligned halves
    t = np.arange(S, dtype=np.float64)
    f = np.arange(F, dtype=np.float64)
    ang = 2.0 * np.pi * f[:, None] * t[None, :] / S              # (F, S)
    inv_sqrt_s = 1.0 / math.sqrt(S)

    cr = np.zeros((Fp, S), np.float64)
    ci = np.zeros((Fp, S), np.float64)
    cr[:F] = np.cos(ang) * inv_sqrt_s
    ci[:F] = -np.sin(ang) * inv_sqrt_s
    bfwd = np.concatenate([cr, ci], axis=0)                      # (2Fp, S)

    c = np.full((F,), 2.0, np.float64)
    c[0] = 1.0
    if S % 2 == 0:
        c[F - 1] = 1.0

    return (jnp.asarray(bfwd, jnp.bfloat16),
            jnp.asarray(c, jnp.float32), F, Fp)


def _vmem_capacity_bytes():
    try:
        return int(pltpu.get_tpu_info().vmem_capacity_bytes)
    except Exception:
        return 64 << 20   # conservative default (v7x per-core VMEM)


def _pick_batch_tile(B, S, D, const_bytes, vmem_cap):
    """Largest divisor of B whose double-buffered x/out blocks fit the budget,
    capped at B//2 so the grid keeps >= 2 steps (v7x megacore)."""
    budget = min(48 << 20, max(4 << 20, vmem_cap // 2 - const_bytes))
    per_batch = 2 * 2 * S * D * 4          # (x + out) blocks, double-buffered f32
    cap_bt = max(1, budget // per_batch)
    max_bt = max(1, B // 2)
    bt = 1
    for d in range(1, max_bt + 1):
        if B % d == 0 and d <= cap_bt:
            bt = d
    return bt


def filter_layer(x, wr, wi, gamma, beta):
    B, S, D = x.shape
    bfwd, c, F, Fp = _dft_basis(S)

    vmem_cap = _vmem_capacity_bytes()
    const_bytes = 2 * Fp * S * 2           # resident bf16 basis (single-buffered)
    bt = _pick_batch_tile(B, S, D, const_bytes, vmem_cap)
    nblk = B // bt
    btD = bt * D

    # Fold the irfft scale c into the weights, zero-pad frequencies to Fp, and
    # tile along the (batch-folded) lane axis so the in-kernel multiply needs
    # no reshape.
    wr_p = jnp.pad(wr.astype(jnp.float32) * c[:, None], ((0, Fp - F), (0, 0)))
    wi_p = jnp.pad(wi.astype(jnp.float32) * c[:, None], ((0, Fp - F), (0, 0)))
    wr_t = jnp.tile(wr_p, (1, bt))                       # (Fp, bt*D)
    wi_t = jnp.tile(wi_p, (1, bt))                       # (Fp, bt*D)
    gamma_t = jnp.tile(gamma.reshape(1, D).astype(jnp.float32), (1, bt))
    beta_t = jnp.tile(beta.reshape(1, D).astype(jnp.float32), (1, bt))

    # Block-diagonal group-mean matrix for LayerNorm over D inside the lanes.
    gmat = jnp.asarray(np.kron(np.eye(bt), np.full((D, D), 1.0 / D)),
                       jnp.float32)                      # (bt*D, bt*D)

    # Layout plumbing in the wrapper: fold batch into the matmul lane dim.
    x3 = (x.astype(jnp.float32)
          .reshape(nblk, bt, S, D)
          .transpose(0, 2, 1, 3)
          .reshape(nblk, S, btD))

    def const_spec(shape):
        return pl.BlockSpec(shape, lambda i, _n=len(shape): (0,) * _n,
                            pipeline_mode=pl.Buffered(1))   # single-buffered

    # Explicit VMEM budget (resident constants single-buffered, x/out blocks
    # double-buffered, plus headroom for in-register temporaries).
    est = (2 * 2 * S * btD * 4           # x + out blocks, double-buffered f32
           + 2 * Fp * S * 2              # bfwd bf16
           + 2 * Fp * btD * 4            # wr, wi
           + btD * btD * 4               # group-mean matrix
           + 2 * btD * 4                 # gamma, beta
           + 8 * 2 * Fp * btD * 4        # spectral temporaries headroom
           + 8 * S * btD * 4)            # time-domain temporaries headroom
    vmem_limit = int(min(vmem_cap - (8 << 20), max(32 << 20, 2 * est)))
    vmem_limit = max(vmem_limit, est)

    out3 = pl.pallas_call(
        filter_layer_kernel,
        out_shape=jax.ShapeDtypeStruct((nblk, S, btD), jnp.float32),
        grid=(nblk,),
        in_specs=[
            pl.BlockSpec((1, S, btD), lambda i: (i, 0, 0)),   # x (lane-folded)
            const_spec((2 * Fp, S)),                          # stacked fwd basis
            const_spec((Fp, btD)),                            # wr (c-scaled, tiled)
            const_spec((Fp, btD)),                            # wi (c-scaled, tiled)
            const_spec((btD, btD)),                           # group-mean matrix
            const_spec((1, btD)),                             # gamma (tiled)
            const_spec((1, btD)),                             # beta (tiled)
        ],
        out_specs=pl.BlockSpec((1, S, btD), lambda i: (i, 0, 0)),
        compiler_params=pltpu.CompilerParams(
            dimension_semantics=("parallel",),   # batch blocks are independent
            vmem_limit_bytes=vmem_limit,
        ),
    )(x3, bfwd, wr_t, wi_t, gmat, gamma_t, beta_t)

    # Undo the wrapper-side layout fold: (nblk, S, bt*D) -> (B, S, D).
    return (out3.reshape(nblk, S, bt, D)
            .transpose(0, 2, 1, 3)
            .reshape(B, S, D))


def filter_layer_ref(x, wr, wi, gamma, beta):
    """Pure-JAX reference mirroring the PyTorch forward (eval mode)."""
    B, S, D = x.shape
    xf = jnp.fft.rfft(x, axis=1, norm="ortho")
    w = wr + 1j * wi
    xf = xf * w[None, :, :]
    y = jnp.fft.irfft(xf, n=S, axis=1, norm="ortho")
    h = y + x
    mean = jnp.mean(h, axis=-1, keepdims=True)
    var = jnp.mean((h - mean) ** 2, axis=-1, keepdims=True)
    return (h - mean) / jnp.sqrt(var + 1e-12) * gamma + beta


if __name__ == "__main__":
    # small shapes consistent with the module: (batch=2, seq=8, hidden=32)
    B, S, D = 2, 8, 32
    F = S // 2 + 1

    key = jax.random.PRNGKey(0)
    kx, kw = jax.random.split(key)
    x = jax.random.normal(kx, (B, S, D), dtype=jnp.float32)

    # complex_weight ~ randn(1, S//2+1, D, 2) * 0.02 ; gamma=1, beta=0 (LayerNorm init)
    cw = jax.random.normal(kw, (1, F, D, 2), dtype=jnp.float32) * 0.02
    wr = cw[0, :, :, 0]
    wi = cw[0, :, :, 1]
    gamma = jnp.ones((D,), jnp.float32)
    beta = jnp.zeros((D,), jnp.float32)

    out = jax.block_until_ready(filter_layer(x, wr, wi, gamma, beta))
    ref = jax.block_until_ready(filter_layer_ref(x, wr, wi, gamma, beta))

    assert out.shape == (B, S, D)
    err = float(jnp.max(jnp.abs(out - ref)))
    # tolerance accounts for bf16 matmul operands (accumulation is f32)
    assert err < 5e-2, f"mismatch vs reference: {err}"
    print("KERNEL_OK")
</pallas_src>

<mosaic_0001>
module attributes {stable_mosaic.version = 11 : i64} {
  func.func @filter_layer_kernel(%arg0: i32, %arg1: memref<1x8x32xf32, #tpu.memory_space<vmem>>, %arg2: memref<32x8xbf16, #tpu.memory_space<vmem>>, %arg3: memref<16x32xf32, #tpu.memory_space<vmem>>, %arg4: memref<16x32xf32, #tpu.memory_space<vmem>>, %arg5: memref<32x32xf32, #tpu.memory_space<vmem>>, %arg6: memref<1x32xf32, #tpu.memory_space<vmem>>, %arg7: memref<1x32xf32, #tpu.memory_space<vmem>>, %arg8: memref<1x8x32xf32, #tpu.memory_space<vmem>>) attributes {dimension_semantics = [#tpu.dimension_semantics<parallel>], iteration_bounds = array<i64: 2>, scalar_prefetch = 0 : i64, scratch_operands = 0 : i64, tpu.core_type = #tpu.core_type<tc>, window_params = [{transform_indices = @transform_0, window_bounds = array<i64: 1, 8, 32>}, {pipeline_mode = #tpu.pipeline_mode<synchronous>, transform_indices = @transform_1, window_bounds = array<i64: 32, 8>}, {pipeline_mode = #tpu.pipeline_mode<synchronous>, transform_indices = @transform_2, window_bounds = array<i64: 16, 32>}, {pipeline_mode = #tpu.pipeline_mode<synchronous>, transform_indices = @transform_3, window_bounds = array<i64: 16, 32>}, {pipeline_mode = #tpu.pipeline_mode<synchronous>, transform_indices = @transform_4, window_bounds = array<i64: 32, 32>}, {pipeline_mode = #tpu.pipeline_mode<synchronous>, transform_indices = @transform_5, window_bounds = array<i64: 1, 32>}, {pipeline_mode = #tpu.pipeline_mode<synchronous>, transform_indices = @transform_6, window_bounds = array<i64: 1, 32>}, {transform_indices = @transform_7, window_bounds = array<i64: 1, 8, 32>}]} {
    %c0 = arith.constant 0 : index
    %c0_0 = arith.constant 0 : index
    %c0_1 = arith.constant 0 : index
    %0 = vector.load %arg1[%c0, %c0_0, %c0_1] : memref<1x8x32xf32, #tpu.memory_space<vmem>>, vector<1x8x32xf32>
    %1 = vector.shape_cast %0 : vector<1x8x32xf32> to vector<8x32xf32>
    %c0_2 = arith.constant 0 : index
    %c0_3 = arith.constant 0 : index
    %2 = vector.load %arg2[%c0_2, %c0_3] : memref<32x8xbf16, #tpu.memory_space<vmem>>, vector<32x8xbf16>
    %3 = arith.truncf %1 : vector<8x32xf32> to vector<8x32xbf16>
    %cst = arith.constant dense<0.000000e+00> : vector<32x32xf32>
    %4 = tpu.matmul %2, %3, %cst {dimension_numbers = #tpu.dot_dimension_numbers<[1], [0], [0], [1], [0, 0, 1, 1], [], []>} : vector<32x8xbf16>, vector<8x32xbf16>, vector<32x32xf32> -> vector<32x32xf32>
    %5 = vector.extract_strided_slice %4 {offsets = [0, 0], sizes = [16, 32], strides = [1, 1]} : vector<32x32xf32> to vector<16x32xf32>
    %6 = vector.extract_strided_slice %4 {offsets = [16, 0], sizes = [16, 32], strides = [1, 1]} : vector<32x32xf32> to vector<16x32xf32>
    %c0_4 = arith.constant 0 : index
    %c0_5 = arith.constant 0 : index
    %7 = vector.load %arg3[%c0_4, %c0_5] : memref<16x32xf32, #tpu.memory_space<vmem>>, vector<16x32xf32>
    %c0_6 = arith.constant 0 : index
    %c0_7 = arith.constant 0 : index
    %8 = vector.load %arg4[%c0_6, %c0_7] : memref<16x32xf32, #tpu.memory_space<vmem>>, vector<16x32xf32>
    %9 = arith.mulf %5, %7 : vector<16x32xf32>
    %10 = arith.mulf %6, %8 : vector<16x32xf32>
    %11 = arith.subf %9, %10 : vector<16x32xf32>
    %12 = arith.mulf %5, %8 : vector<16x32xf32>
    %13 = arith.mulf %6, %7 : vector<16x32xf32>
    %14 = arith.addf %12, %13 : vector<16x32xf32>
    %15 = tpu.concatenate %11, %14 in 0 : vector<16x32xf32>, vector<16x32xf32> -> vector<32x32xf32>
    %16 = arith.truncf %15 : vector<32x32xf32> to vector<32x32xbf16>
    %cst_8 = arith.constant dense<0.000000e+00> : vector<8x32xf32>
    %17 = tpu.matmul %2, %16, %cst_8 {dimension_numbers = #tpu.dot_dimension_numbers<[0], [0], [1], [1], [0, 1, 1, 1], [], []>} : vector<32x8xbf16>, vector<32x32xbf16>, vector<8x32xf32> -> vector<8x32xf32>
    %18 = arith.addf %17, %1 : vector<8x32xf32>
    %c0_9 = arith.constant 0 : index
    %c0_10 = arith.constant 0 : index
    %19 = vector.load %arg5[%c0_9, %c0_10] : memref<32x32xf32, #tpu.memory_space<vmem>>, vector<32x32xf32>
    %cst_11 = arith.constant dense<0.000000e+00> : vector<8x32xf32>
    %20 = tpu.matmul %18, %19, %cst_11 {dimension_numbers = #tpu.dot_dimension_numbers<[1], [0], [0], [1], [0, 0, 1, 1], [], []>} : vector<8x32xf32>, vector<32x32xf32>, vector<8x32xf32> -> vector<8x32xf32>
    %21 = arith.subf %18, %20 : vector<8x32xf32>
    %22 = arith.mulf %21, %21 : vector<8x32xf32>
    %cst_12 = arith.constant dense<0.000000e+00> : vector<8x32xf32>
    %23 = tpu.matmul %22, %19, %cst_12 {dimension_numbers = #tpu.dot_dimension_numbers<[1], [0], [0], [1], [0, 0, 1, 1], [], []>} : vector<8x32xf32>, vector<32x32xf32>, vector<8x32xf32> -> vector<8x32xf32>
    %cst_13 = arith.constant 9.99999996E-13 : f32
    %24 = vector.broadcast %cst_13 : f32 to vector<8x32xf32>
    %25 = arith.addf %23, %24 : vector<8x32xf32>
    %26 = math.rsqrt %25 : vector<8x32xf32>
    %27 = arith.mulf %21, %26 : vector<8x32xf32>
    %c0_14 = arith.constant 0 : index
    %c0_15 = arith.constant 0 : index
    %28 = vector.load %arg6[%c0_14, %c0_15] : memref<1x32xf32, #tpu.memory_space<vmem>>, vector<1x32xf32>
    %29 = vector.broadcast %28 : vector<1x32xf32> to vector<8x32xf32>
    %30 = arith.mulf %27, %29 : vector<8x32xf32>
    %c0_16 = arith.constant 0 : index
    %c0_17 = arith.constant 0 : index
    %31 = vector.load %arg7[%c0_16, %c0_17] : memref<1x32xf32, #tpu.memory_space<vmem>>, vector<1x32xf32>
    %32 = vector.broadcast %31 : vector<1x32xf32> to vector<8x32xf32>
    %33 = arith.addf %30, %32 : vector<8x32xf32>
    %c0_18 = arith.constant 0 : index
    %c0_19 = arith.constant 0 : index
    %c0_20 = arith.constant 0 : index
    %34 = vector.load %arg8[%c0_18, %c0_19, %c0_20] : memref<1x8x32xf32, #tpu.memory_space<vmem>>, vector<1x8x32xf32>
    %35 = vector.shape_cast %34 : vector<1x8x32xf32> to vector<8x32xf32>
    %36 = vector.shape_cast %33 : vector<8x32xf32> to vector<1x8x32xf32>
    tpu.vector_store %arg8[%c0_18, %c0_19, %c0_20], %36 {strides = array<i32>} : memref<1x8x32xf32, #tpu.memory_space<vmem>>, vector<1x8x32xf32>,
    return
  }
  func.func @transform_0(%arg0: i32) -> (i32, i32, i32) {
    %c0_i32 = arith.constant 0 : i32
    %c0_i32_0 = arith.constant 0 : i32
    %c0_i32_1 = arith.constant 0 : i32
    return %arg0, %c0_i32, %c0_i32_0 : i32, i32, i32
  }
  func.func @transform_1(%arg0: i32) -> (i32, i32) {
    %c0_i32 = arith.constant 0 : i32
    %c0_i32_0 = arith.constant 0 : i32
    %c0_i32_1 = arith.constant 0 : i32
    return %c0_i32, %c0_i32_0 : i32, i32
  }
  func.func @transform_2(%arg0: i32) -> (i32, i32) {
    %c0_i32 = arith.constant 0 : i32
    %c0_i32_0 = arith.constant 0 : i32
    %c0_i32_1 = arith.constant 0 : i32
    return %c0_i32, %c0_i32_0 : i32, i32
  }
  func.func @transform_3(%arg0: i32) -> (i32, i32) {
    %c0_i32 = arith.constant 0 : i32
    %c0_i32_0 = arith.constant 0 : i32
    %c0_i32_1 = arith.constant 0 : i32
    return %c0_i32, %c0_i32_0 : i32, i32
  }
  func.func @transform_4(%arg0: i32) -> (i32, i32) {
    %c0_i32 = arith.constant 0 : i32
    %c0_i32_0 = arith.constant 0 : i32
    %c0_i32_1 = arith.constant 0 : i32
    return %c0_i32, %c0_i32_0 : i32, i32
  }
  func.func @transform_5(%arg0: i32) -> (i32, i32) {
    %c0_i32 = arith.constant 0 : i32
    %c0_i32_0 = arith.constant 0 : i32
    %c0_i32_1 = arith.constant 0 : i32
    return %c0_i32, %c0_i32_0 : i32, i32
  }
  func.func @transform_6(%arg0: i32) -> (i32, i32) {
    %c0_i32 = arith.constant 0 : i32
    %c0_i32_0 = arith.constant 0 : i32
    %c0_i32_1 = arith.constant 0 : i32
    return %c0_i32, %c0_i32_0 : i32, i32
  }
  func.func @transform_7(%arg0: i32) -> (i32, i32, i32) {
    %c0_i32 = arith.constant 0 : i32
    %c0_i32_0 = arith.constant 0 : i32
    %c0_i32_1 = arith.constant 0 : i32
    return %arg0, %c0_i32, %c0_i32_0 : i32, i32, i32
  }
}

</mosaic_0001>

<bundles_post_ra>
// kernel: tpu_custom_call.1
= control target key start
LH: loop header
LB: loop body
LE: loop exit
PB: predicated region body
PF: predicated region fallthrough
CT: control target
= control target key end

     0   :  { %12 = vsyncpa [#allocation3], 0  ;;  %s1392_s0 = inlined_call_operand.hbm [shape: f32[2,8,32], index: 0, kind: input, shape index: {}]   ;;  %s1393_s1 = inlined_call_operand.vmem [shape: bf16[32,8], index: 1, kind: input, shape index: {}]   ;;  %s1394_s2 = inlined_call_operand.hbm [shape: f32[16,32], index: 2, kind: input, shape index: {}]   ;;  %s1395_s3 = inlined_call_operand.hbm [shape: f32[16,32], index: 3, kind: input, shape index: {}]   ;;  %s1396_s4 = inlined_call_operand.vmem [shape: f32[32,32], index: 4, kind: input, shape index: {}]   ;;  %s1397_s5 = inlined_call_operand.vmem [shape: f32[1,32], index: 5, kind: input, shape index: {}]   ;;  %s1398_s6 = inlined_call_operand.vmem [shape: f32[1,32], index: 6, kind: input, shape index: {}]   ;;  %s1399_s7 = inlined_call_operand.hbm [shape: f32[2,8,32], index: 7, kind: output, shape index: {}]  }
   0x1   :  { %14 = vsyncpa [#allocation3 + $0x1], 0 }
   0x2   :  { %15 = vsyncpa [#allocation6], 0 }
   0x3   :  { %16 = vsyncpa [#allocation4], 0 }
   0x4   :  { %18 = vsyncpa [#allocation4 + $0x1], 0  ;;  %s1128_s24 = smov 0   ;;  %s1130_s25 = smov 0  }
   0x5   :  { %s1132_s26 = smov 0   ;;  %s1134_s27 = smov 0  }
   0x6 LB: > { %s1149_s28 = sadd.s32 4294967295, %s1077_s27   ;;  %s754_s29 = sadd.s32 4294967294, %s1077_s27   ;;  %s1077_s27 = sphi %s1134_s27, %s1419_s27   ;;  %s1073_s26 = sphi %s1132_s26, %s1418_s26   ;;  %s1069_s25 = sphi %s1130_s25, %s1417_s25   ;;  %s1065_s24 = sphi %s1128_s24, %s1416_s24  }
   0x7   : > { %p44_p0 = scmp.ne.s32.totalorder %s1069_s25, %s1065_s24  ;;  %p1400_p1 = scmp.eq.s32.totalorder %s1149_s28, 0 }
   0x8   : > { %p200_p3 = scmp.eq.s32.totalorder %s754_s29, 1  ;;  %p755_p5 = scmp.ge.s32.totalorder %s1077_s27, 1 }
   0x9   : > { %p1158_p4 = por %p1400_p1, %p44_p0  ;;  %p207_p7 = scmp.lt.s32.totalorder %s1077_s27, 3 }
   0xa   : > { %p1163_p6 = por %p200_p3, %p44_p0  ;;  %s1079_s10 = smov [#allocation5]  }
   0xb   : > { %s1403_s30 = scalar_select %p1158_p4, 1, 0 }
   0xc   : > { %s1404_s8 = scalar_select %p1163_p6, 1, 0 }
   0xd   : > { %p1168_p8 = pnand %p755_p5, %p207_p7  ;;  %s222_s11 = sshll.u32 %s1079_s10, 4  ;;  %s1172_s11 = int_to_ptr.vmem [resolvable:$true] %s222_s11 }
   0xe   : > { %s1080_s13 = smov [#allocation7]   ;;  %s921_s17 = scalar_lea.hbm %s1394_s2, 256 }
   0xf   : > { %p856_p9 = pneg %p1168_p8  ;;  %s235_s14 = sshll.u32 %s1080_s13, 4  ;;  %s1183_s14 = int_to_ptr.vmem [resolvable:$true] %s235_s14 }
  0x10   : > { %p922_p12 = scmp.ne.s32.totalorder %s1394_s2, %s921_s17  ;;  %p928_p5 = scmp.lt.u32.totalorder %s921_s17, %s1394_s2 }
  0x11   : > { %p1179_p11 = pnand %p856_p9, %p1400_p1 }
  0x13   : > { %p923_p13 = pneg %p1179_p11 }
  0x15   : > { %p924_p0 = pnand %p923_p13, %p922_p12 }
  0x17   : > { %p925_p3 = pneg %p924_p0 }
  0x19   : > { %p930_p7 = pnand %p928_p5, %p925_p3 }
  0x1b   : > { %933 = shalt.err (!%p930_p7)
}
  0x1c   : > { %s934_s22 = scalar_lea.vmem %s1172_s11, 256  ;;  %p942_p2 = scmp.lt.s32.totalorder %s1172_s11, %s1172_s11 }
  0x1d   : > { %p935_p9 = scmp.ne.s32.totalorder %s1172_s11, %s934_s22  ;;  %p943_p12 = scmp.lt.s32.totalorder %s934_s22, %s934_s22 }
  0x1f   : > { %p937_p10 = pnand %p935_p9, %p923_p13  ;;  %p944_p0 = por %p943_p12, %p942_p2 }
  0x21   : > { %p938_p1 = pneg %p937_p10 }
  0x23   : > { %p945_p6 = pnand %p944_p0, %p938_p1 }
  0x25   : > { %948 = shalt.err (!%p945_p6)
}
  0x26   : > { %s1081_s23 = smov 128   ;;  %s1082_s29 = smov 8  }
  0x27   : > { %859 = dma.hbm_to_vmem [thread:$0]  (!%p1179_p11), %s1394_s2, 256, %s1172_s11, [#allocation6], %s1081_s23, %s1081_s23, %s1082_s29  }
  0x28   : > { %s949_s17 = scalar_lea.hbm %s1395_s3, 256 }
  0x29   : > { %p950_p2 = scmp.ne.s32.totalorder %s1395_s3, %s949_s17  ;;  %p956_p10 = scmp.lt.u32.totalorder %s949_s17, %s1395_s3 }
  0x2b   : > { %p952_p1 = pnand %p950_p2, %p923_p13 }
  0x2d   : > { %p953_p6 = pneg %p952_p1 }
  0x2f   : > { %p958_p3 = pnand %p956_p10, %p953_p6 }
  0x31   : > { %961 = shalt.err (!%p958_p3)
}
  0x32   : > { %s962_s11 = scalar_lea.vmem %s1183_s14, 256  ;;  %p970_p12 = scmp.lt.s32.totalorder %s1183_s14, %s1183_s14 }
  0x33   : > { %p963_p5 = scmp.ne.s32.totalorder %s1183_s14, %s962_s11  ;;  %p971_p0 = scmp.lt.s32.totalorder %s962_s11, %s962_s11 }
  0x35   : > { %p965_p7 = pnand %p963_p5, %p923_p13  ;;  %p972_p2 = por %p971_p0, %p970_p12 }
  0x37   : > { %p966_p9 = pneg %p965_p7 }
  0x39   : > { %p973_p1 = pnand %p972_p2, %p966_p9 }
  0x3b   : > { %976 = shalt.err (!%p973_p1)
}
  0x3c   : > { %862 = dma.hbm_to_vmem [thread:$0]  (!%p1179_p11), %s1395_s3, 256, %s1183_s14, [#allocation6], %s1081_s23, %s1081_s23, %s1082_s29  }
  0x3d   : > { %s1238_s13 = sadd.s32 1, %s1077_s27   ;;  %s31_s12 = sadd.s32 1, %s1073_s26 }
  0x3e   : > { %s28_s15 = ssub.s32 %s1077_s27, %s1238_s13  ;;  %p38_p13 = scmp.ne.s32.totalorder %s1073_s26, %s1069_s25 }
  0x3f   : > { %p29_p6 = scmp.eq.s32.totalorder %s28_s15, 0  ;;  %p39_p10 = scmp.eq.s32.totalorder %s1077_s27, 0 }
  0x40   : > { %p1407_p3 = scmp.eq.s32.totalorder %s1149_s28, 1  ;;  %p873_p7 = scmp.lt.s32.totalorder %s1077_s27, 2 }
  0x41   : > { %s1254_s17 = scalar_select %p29_p6, %s1073_s26, %s31_s12  }
  0x42   : > { %p1248_p5 = por %p1407_p3, %p38_p13  ;;  %p40_p9 = por %p39_p10, %p38_p13 }
  0x43   : > { %s258_s18 = sand.u32 1, %s1073_s26   ;;  %s760_s14 = sshll.u32 %s1077_s27, 7 }
  0x44   : > { %s1408_s16 = scalar_select %p1248_p5, 1, 0 }
  0x45   : > { %s759_s19 = sshll.u32 %s258_s18, 3  ;;  %s1261_s20 = scalar_lea.hbm %s1392_s0, %s760_s14 }
  0x46   : > { %s262_s21 = scalar_lea.vmem [#allocation2], %s759_s19  ;;  %p1265_p11 = pnand %p873_p7, %p40_p9 }
  0x47   : > { %s269_s11 = sshll.u32 %s262_s21, 4  ;;  %s259_s10 = scalar_lea.sflag [#allocation3], %s258_s18  ;;  %s1263_s11 = int_to_ptr.vmem [resolvable:$true] %s269_s11 }
  0x48   : > { %s977_s12 = scalar_lea.hbm %s1261_s20, 128  ;;  %p979_p0 = pneg %p1265_p11 }
  0x49   : > { %p978_p12 = scmp.ne.s32.totalorder %s1261_s20, %s977_s12  ;;  %s982_s14 = scalar_lea.hbm %s1392_s0, 256 }
  0x4a   : > { %p983_p13 = scmp.lt.u32.totalorder %s1261_s20, %s1392_s0  ;;  %p984_p6 = scmp.lt.u32.totalorder %s982_s14, %s977_s12 }
  0x4b   : > { %p980_p2 = pnand %p979_p0, %p978_p12  ;;  %p986_p3 = scmp.lt.u32.totalorder %s977_s12, %s1261_s20 }
  0x4c   : > { %p985_p10 = por %p984_p6, %p983_p13 }
  0x4d   : > { %p981_p1 = pneg %p980_p2 }
  0x4e   : > { %p987_p7 = por %p986_p3, %p985_p10 }
  0x50   : > { %p988_p9 = pnand %p987_p7, %p981_p1 }
  0x52   : > { %991 = shalt.err (!%p988_p9)
}
  0x53   : > { %s992_s18 = scalar_lea.vmem %s1263_s11, 128  ;;  %s1083_s21 = smov [#allocation2]  }
  0x54   : > { %p993_p12 = scmp.ne.s32.totalorder %s1263_s11, %s992_s18  ;;  %s997_s15 = sshll.u32 %s1083_s21, 4  ;;  %s998_s15 = int_to_ptr.vmem [resolvable:$false] %s997_s15 }
  0x55   : > { %s999_s19 = scalar_lea.vmem %s998_s15, 256  ;;  %p1000_p4 = scmp.lt.s32.totalorder %s1263_s11, %s998_s15 }
  0x56   : > { %p995_p2 = pnand %p993_p12, %p979_p0  ;;  %p1001_p13 = scmp.lt.s32.totalorder %s999_s19, %s992_s18 }
  0x58   : > { %p996_p5 = pneg %p995_p2  ;;  %p1002_p6 = por %p1001_p13, %p1000_p4 }
  0x5a   : > { %p1003_p10 = pnand %p1002_p6, %p996_p5 }
  0x5c   : > { %1006 = shalt.err (!%p1003_p10)
}
  0x5d   : > { %866 = dma.hbm_to_vmem [thread:$0]  (!%p1265_p11), %s1261_s20, 128, %s1263_s11, %s259_s10  }
  0x5e   : > { %278 = sbr.rel (%p1168_p8) target bundleno = 1015 (0x3f7), region = 48  ;;  %s1297_s12 = sand.u32 (!%p1168_p8), 1, %s1069_s25  }
  0x5f   : > { %s762_s14 = sshll.u32 (!%p1168_p8), %s1297_s12, 3  ;;  %s281_s23 = scalar_lea.sflag (!%p1168_p8), [#allocation3], %s1297_s12 }
  0x60   : > { %s284_s29 = scalar_lea.vmem (!%p1168_p8), [#allocation2], %s762_s14  ;;  %p1410_p4 = scmp.ne.s32.totalorder (!%p1168_p8), %s1403_s30, 0 }
  0x65   : > { %1052 = dma.done.wait (%p1410_p4), %s281_s23, 128  }
  0x66   : > { %1054 = vsyncadd (%p1410_p4), %s281_s23, 4294967168  ;;  %p1411_p5 = scmp.eq.s32.totalorder %s1149_s28, 0 }
  0x68   : > { %1056 = dma.done.wait (%p1411_p5), [#allocation6], 512   ;;  %p1412_p8 = pmov %p1411_p5 }
  0x69   : > { %vm347_vm0 = vcmask 1043456   ;;  %v324_v0 = vld [vmem:[%s284_s29] sm:$0xff]  ;;  %vm340_vm1 = vcmask 64512   ;;  %v1084_v5 = vmov 0.0   ;;  %vm1085_vm2 = vmmov 0   ;;  %v482_v8 = vld [vmem:[%s1396_s4 + $0x10] sm:$0xff] }
  0x6a   : > { %1058 = vsyncadd (%p1412_p8), [#allocation6], 4294966784  ;;  %v329_v1 = vpack.c.bf16 %v324_v0, %v324_v0  ;;  %v917_v2 = vld [vmem:[%s1393_s1] sm:$0xff]   ;;  %v918_v4 = vld [vmem:[%s1393_s1 + $0x8] sm:$0xff]   ;;  %801 = vmatprep.subr.bf16.mxu1 %v1084_v5  ;;  %805 = vmatprep.mubr.msk.bf16.mxu1 %vm1085_vm2, %v1084_v5  ;;  %v1086_v9 = vmov 0.0|0.0   ;;  %vm436_vm3 = vcmask 261120  }
  0x6b   : > { %797 = vmatprep.mubr.msk.bf16.mxu0 %vm340_vm1, %v917_v2  ;;  %420 = vxpose.xlu0.c.b16.start [1/2] (short) (narrow) %v917_v2, 16  ;;  %v480_v6 = vld [vmem:[%s1396_s4] sm:$0xff]  ;;  %v481_v7 = vld [vmem:[%s1396_s4 + $0x8] sm:$0xff]  ;;  %v483_v11 = vld [vmem:[%s1396_s4 + $0x18] sm:$0xff]  ;;  %s776_s22 = sshll.u32 %s1149_s28, 7  ;;  %s322_s10 = scalar_lea.vmem [#allocation8], %s762_s14 }
  0x6c   : > { %843 = vmatprep.subr.msk.bf16.mxu0 %vm347_vm0, %v329_v1  ;;  %v349_v3 = vsel %vm347_vm0, %v329_v1, 0  ;;  %v832_v10 = vpack.c.bf16 %v481_v7, %v480_v6  ;;  %v835_v12 = vpack.c.bf16 %v483_v11, %v482_v8  ;;  %v400_v13 = vld [vmem:[#allocation5] sm:$0xff]  ;;  %v402_v14 = vld [vmem:[#allocation7] sm:$0xff]  ;;  %v401_v16 = vld [vmem:[#allocation5 + $0x8] sm:$0xff]  ;;  %s665_s18 = sshll.u32 %s322_s10, 4  ;;  %s1347_s19 = scalar_lea.hbm %s1399_s7, %s776_s22  ;;  %s1349_s18 = int_to_ptr.vmem [resolvable:$true] %s665_s18 }
  0x6d   : > { %796 = vmatpush3.bf16.msra.mxu0 %v349_v3  ;;  %v403_v17 = vld [vmem:[#allocation7 + $0x8] sm:$0xff]  ;;  %v773_v49 = vld [vmem:[%s1397_s5] ss:$0 sm:$0xff]  ;;  %s652_s23 = scalar_lea.sflag [#allocation4], %s1297_s12  ;;  %s1007_s29 = scalar_lea.vmem %s1349_s18, 128 }
  0x6e   : > { %831 = vmatprep.subr.bf16.mxu0 %v1086_v9  ;;  %v774_v51 = vld [vmem:[%s1398_s6] ss:$0 sm:$0xff]  ;;  %p1008_p11 = scmp.ne.s32.totalorder %s1349_s18, %s1007_s29  ;;  %p1413_p0 = scmp.ne.s32.totalorder %s1408_s16, 0 }
  0x6f   : > { %421 = vxpose.xlu0.c.b16.end [2/2] (short) (narrow) %v918_v4, 16  ;;  %s1087_s28 = smov [#allocation8]  }
  0x70   : > { %798 = vmatmul.mubr.msk.bf16.vlgmr.msra.gmra.mrb[0].mxu0 %vm340_vm1, %v918_v4  ;;  %p1009_p1 = pnand %p1008_p11, %p1413_p0  ;;  %s1011_s14 = sshll.u32 %s1087_s28, 4  ;;  %s1012_s14 = int_to_ptr.vmem [resolvable:$false] %s1011_s14 }
  0x71   : > { %817 = vmatprep.mubr.msk.f32.mxu0 %vm1085_vm2, %v1084_v5  ;;  %833 = vmatpush3.bf16.msra.mxu0 %v832_v10  ;;  %s1013_s9 = scalar_lea.vmem %s1012_s14, 256  ;;  %p1014_p7 = scmp.lt.s32.totalorder %s1349_s18, %s1012_s14 }
  0x72   : > { %834 = vmatprep.subr.bf16.mxu0 %v1086_v9  ;;  %p1010_p3 = pneg %p1009_p1  ;;  %p1015_p9 = scmp.lt.s32.totalorder %s1013_s9, %s1007_s29 }
  0x74   : > { %p1016_p12 = por %p1015_p9, %p1014_p7 }
  0x75   : > { %836 = vmatpush3.bf16.msra.mxu0 %v835_v12 }
  0x76   : > { %p1017_p2 = pnand %p1016_p12, %p1010_p3 }
  0xd1   : > { %v428_v35 = vpop.trf.xlu0 }
 0x143   : > { %v799_v15 = vpop.f32.mrb[0].mxu0 }
 0x144   : > { %v406_v18 = vmul.f32 %v799_v15, %v402_v14  ;;  %v412_v19 = vmul.f32 %v799_v15, %v400_v13  ;;  %v385_v20 = vpop.f32.mrb[1].mxu0 }
 0x145   : > { %v404_v21 = vmul.f32 %v400_v13, %v385_v20  ;;  %v410_v22 = vmul.f32 %v402_v14, %v385_v20  ;;  %v800_v23 = vpop.f32.mrb[2].mxu0 }
 0x146   : > { %v407_v24 = vmul.f32 %v800_v23, %v403_v17  ;;  %v413_v25 = vmul.f32 %v800_v23, %v401_v16  ;;  %v388_v26 = vpop.f32.mrb[3].mxu0 }
 0x147   : > { %v414_v27 = vadd.f32 %v412_v19, %v410_v22  ;;  %v405_v28 = vmul.f32 %v401_v16, %v388_v26  ;;  %v411_v29 = vmul.f32 %v403_v17, %v388_v26  ;;  %v408_v30 = vsub.f32 %v404_v21, %v406_v18 }
 0x149   : > { %v415_v31 = vadd.f32 %v413_v25, %v411_v29  ;;  %v409_v32 = vsub.f32 %v405_v28, %v407_v24 }
 0x14b   : > { %v416_v33 = vpack.c.bf16 %v409_v32, %v408_v30  ;;  %v417_v34 = vpack.c.bf16 %v415_v31, %v414_v27 }
 0x14d   : > { %802 = vmatpush3.bf16.msra.mxu1 %v416_v33 }
 0x14e   : > { %803 = vmatprep.subr.bf16.mxu1 %v1084_v5 }
 0x151   : > { %804 = vmatpush3.bf16.msra.mxu1 %v417_v34 }
 0x152   : > { %837 = vmatprep.subr.bf16.mxu1 %v1086_v9 }
 0x154   : > { %806 = vmatmul.mubr.msk.bf16.vlgmr.msra.gmra.mrb[0].mxu1 %vm436_vm3, %v428_v35 }
 0x155   : > { %839 = vmatpush3.bf16.msra.mxu1 %v832_v10  ;;  %828 = vmatprep.mubr.msk.f32.mxu1 %vm1085_vm2, %v1084_v5 }
 0x156   : > { %840 = vmatprep.subr.bf16.mxu1 %v1086_v9 }
 0x159   : > { %842 = vmatpush3.bf16.msra.mxu1 %v835_v12 }
 0x227   : > { %v474_v36 = vpop.f32.mrb[0].mxu1 }
 0x228   : > { %v475_v37 = vadd.f32 %v474_v36, %v324_v0  ;;  %v807_v38 = vpop.f32.mrb[1].mxu1 }
 0x229   : > { %v477_v39 = vpop.f32.mrb[2].mxu1 }
 0x22a   : > { %v808_v40 = vpop.f32.mrb[3].mxu1  ;;  %818 = vmatmul.mubr.msk.f32.vlgmr.msra.gmra.mrb[4].mxu0 %vm436_vm3, %v475_v37 }
 0x2fd   : > { %v553_v41 = vpop.f32.mrb[4].mxu0 }
 0x2fe   : > { %v557_v42 = vsub.f32 %v475_v37, %v553_v41  ;;  %v819_v43 = vpop.f32.mrb[5].mxu0 }
 0x300   : > { %v558_v44 = vmul.f32 %v557_v42, %v557_v42 }
 0x302   : > { %829 = vmatmul.mubr.msk.f32.vlgmr.msra.gmra.mrb[4].mxu1 %vm436_vm3, %v558_v44 }
 0x3d5   : > { %v628_v45 = vpop.f32.mrb[4].mxu1 }
 0x3d6   : > { %v629_v46 = vadd.f32 1e-12, %v628_v45  ;;  %v830_v47 = vpop.f32.mrb[5].mxu1 }
 0x3d8   : > { %919 = vrsqrt.f32 %v629_v46 }
 0x3e2   : > { %v920_v48 = vpop.eup %919 }
 0x3e3   : > { %v633_v50 = vmul.f32 %v920_v48, %v557_v42 }
 0x3e5   : > { %v641_v52 = vmul.f32 %v773_v49, %v633_v50 }
 0x3e7   : > { %v649_v53 = vadd.f32 %v774_v51, %v641_v52 }
 0x3e9   : > { %650 = vst.msk [vmem:[%s322_s10] sm:$0xff] %vm436_vm3, %v649_v53 }
 0x3ea   : > { %1020 = shalt.err (!%p1017_p2)
}
 0x3eb   : > { %s1021_s12 = scalar_lea.hbm %s1347_s19, 128  ;;  %s1025_s30 = scalar_lea.hbm %s1399_s7, 256 }
 0x3ec   : > { %p1022_p13 = scmp.ne.s32.totalorder %s1347_s19, %s1021_s12  ;;  %p1026_p4 = scmp.lt.u32.totalorder %s1347_s19, %s1399_s7 }
 0x3ed   : > { %p1027_p5 = scmp.lt.u32.totalorder %s1025_s30, %s1021_s12  ;;  %p1029_p11 = scmp.lt.u32.totalorder %s1021_s12, %s1347_s19 }
 0x3ee   : > { %p1023_p6 = pnand %p1022_p13, %p1413_p0 }
 0x3ef   : > { %p1028_p8 = por %p1027_p5, %p1026_p4 }
 0x3f0   : > { %p1024_p10 = pneg %p1023_p6 }
 0x3f1   : > { %p1030_p1 = por %p1029_p11, %p1028_p8 }
 0x3f3   : > { %p1031_p3 = pnand %p1030_p1, %p1024_p10 }
 0x3f5   : > { %1034 = shalt.err (!%p1031_p3)
}
 0x3f6   : > { %854 = dma.vmem_to_hbm [thread:$0]  (%p1413_p0), %s1349_s18, 128, %s1347_s19, %s652_s23  }
 0x3f7 PF: > { %s677_s21 = sand.u32 1, %s1065_s24   ;;  %p1414_p7 = scmp.ne.s32.totalorder %s1404_s8, 0 }
 0x3f8   : > { %p1415_p9 = scmp.ge.s32.totalorder %s1077_s27, 2  ;;  %s678_s15 = scalar_lea.sflag [#allocation4], %s677_s21 }
 0x3fa   : > { %p868_p12 = pnand %p1415_p9, %p1414_p7 }
 0x3fc   : > { %1060 = dma.done.wait (!%p868_p12), %s678_s15, 128  }
 0x3fd   : > { %1062 = vsyncadd (!%p868_p12), %s678_s15, 4294967168  ;;  %p21_p2 = scmp.ge.s32.totalorder %s1238_s13, 4   ;;  %s1416_s24 = smov %s1069_s25 }
 0x3fe   : > { %s1417_s25 = smov %s1073_s26  ;;  %s1418_s26 = smov %s1254_s17 }
 0x3ff   : > { %s1419_s27 = smov %s1238_s13  ;;  %23 = sbr.rel (!%p21_p2) target bundleno = 6 (0x6), region = 101 }
 0x406   :  { %683 = vsyncpa [#allocation3], 1 }
 0x407   :  { %685 = vsyncpa [#allocation3 + $0x1], 1 }
 0x408   :  { %686 = vsyncpa [#allocation6], 1 }
 0x409   :  { %687 = vsyncpa [#allocation4], 1 }
 0x40a   :  { %689 = vsyncpa [#allocation4 + $0x1], 1 }

</bundles_post_ra>
